<compile_context>
chip_gen: v6e
topology: v6e:2x2x1
jax: 0.10.0
libtpu: 0.0.40
codegen_flags: <defaults>
</compile_context>

<pallas_src>
import functools

import jax
import jax.numpy as jnp
import numpy as np
from jax.experimental import pallas as pl
from jax.experimental.pallas import tpu as pltpu


# ----------------------------------------------------------------------------
# Small helpers
# ----------------------------------------------------------------------------
def _round_up(a, b):
    return (a + b - 1) // b * b


def _vmem_limit_bytes():
    """Per-generation scoped-VMEM limit: ~half the per-core VMEM, clamped to
    [32 MiB, 64 MiB]  (v5e/v6e: 128 MiB -> 64 MiB; v7x: 64 MiB -> 32 MiB)."""
    cap = None
    try:
        cap = getattr(pltpu.get_tpu_info(), "vmem_capacity_bytes", None)
    except Exception:
        cap = None
    if not cap:
        return 32 * 1024 * 1024
    return int(min(max(cap // 2, 32 * 1024 * 1024), 64 * 1024 * 1024))


def _pick_hw_tile(hw, cin, cout, k, lane_step, in_bytes, out_bytes, budget_bytes):
    """Largest lane tile (multiple of 128, <=4096) whose per-step footprint
    (carried history buffers + im2col slabs + double-buffered I/O blocks) fits."""
    p_al = _round_up((k - 1) * lane_step, 128)
    t = min(_round_up(hw, 128), 4096)

    def footprint(t):
        scratch = 2 * (cin + cout) * (p_al + t)            # bf16 history/ext buffers
        slabs = 2 * k * (cin + cout) * t                   # bf16 im2col slabs (values)
        io = 2 * t * (cin * in_bytes + cout * out_bytes)   # double-buffered x/out blocks
        return scratch + slabs + io

    while t > 128 and footprint(t) > budget_bytes:
        t = max(128, _round_up(t // 2, 128))
    return t


# ----------------------------------------------------------------------------
# Pallas kernel
# ----------------------------------------------------------------------------
def _temporal_block_kernel(x_ref, w1_ref, b1_ref, w2_ref, b2_ref, o_ref,
                           x_ext, h1_ext, *, kernel_size, lane_step, has_downsample):
    """One (batch element, HW tile) per grid step.

    x_ref : (1, Cin, T)                    NCHW input tile, lanes = flattened H*W
    w1_ref: (Cout [+Cout], K*Cin)  bf16    conv1 im2col weights (+ fused 1x1 downsample rows)
    w2_ref: (Cout, K*Cout)         bf16    conv2 im2col weights
    b*_ref: (rows, 1)              f32     biases
    o_ref : (1, Cout, T)                   output tile
    x_ext : (Cin, PA+T)  bf16 scratch      carried x history prefix + current tile
    h1_ext: (Cout, PA+T) bf16 scratch      carried h1 history prefix + current tile
    """
    K = kernel_size
    S = lane_step                       # flattened shift of one dilated tap (= dilation*W)
    P = (K - 1) * S                     # causal history lanes needed per conv stage
    cout = o_ref.shape[1]
    T = x_ref.shape[2]
    pa = x_ext.shape[1] - T             # lane-aligned history prefix (>= P, multiple of 128)

    # First HW tile of a sequence: zero the carried history (== the left zero padding
    # of (K-1)*dilation rows that the PyTorch conv + Chomp2d applies at each stage).
    @pl.when(pl.program_id(1) == 0)
    def _():
        x_ext[:, :pa] = jnp.zeros((x_ext.shape[0], pa), jnp.bfloat16)
        h1_ext[:, :pa] = jnp.zeros((cout, pa), jnp.bfloat16)

    def causal_conv(inp_bf, ext_ref, w_ref, b_ref):
        """Dilated causal conv along H as ONE MXU matmul over an im2col slab.
        inp_bf: (C, T) bf16 current tile.  ext_ref's head carries the previous
        tile's last (K-1)*dilation*W lanes (zeros at sequence start)."""
        ext_ref[:, pa:] = inp_bf                            # lane-aligned store of the tile
        taps = [inp_bf]                                     # delay j = 0
        for j in range(1, K):                               # delay j dilated steps
            off = pa - j * S
            taps.append(ext_ref[:, off:off + T])            # spans carried history + tile
        # Carry history for the next tile.  The loads above are already traced, and the
        # RHS here is a pure value for T >= P, so there is no aliased in-place copy.
        if T >= P:
            ext_ref[:, pa - P:pa] = inp_bf[:, T - P:]
        else:  # tile shorter than the receptive field: keep the still-needed old lanes
            ext_ref[:, pa - P:pa] = jnp.concatenate(
                [ext_ref[:, pa - (P - T):pa], inp_bf], axis=1)
        x_col = jnp.concatenate(taps, axis=0)               # (K*C, T) im2col slab
        y = jnp.dot(w_ref[...], x_col,
                    preferred_element_type=jnp.float32)     # fp32 accumulate on MXU
        return y + b_ref[...]                               # (rows, 1) f32 bias broadcast

    x_bf = x_ref[0].astype(jnp.bfloat16)                    # (Cin, T)

    # conv1 -> chomp -> relu   (+ fused 1x1 downsample rows; dropout = identity in eval)
    y1 = causal_conv(x_bf, x_ext, w1_ref, b1_ref)
    if has_downsample:
        h1 = jnp.maximum(y1[:cout], 0.0)
        res = y1[cout:]                                     # fused residual (wd @ x + bd)
    else:
        h1 = jnp.maximum(y1, 0.0)
        res = x_ref[0].astype(jnp.float32)                  # identity residual (exact)

    # conv2 -> chomp -> relu
    y2 = causal_conv(h1.astype(jnp.bfloat16), h1_ext, w2_ref, b2_ref)
    h2 = jnp.maximum(y2, 0.0)

    o_ref[0] = jnp.maximum(h2 + res, 0.0).astype(o_ref.dtype)


# ----------------------------------------------------------------------------
# Wrapper: weight repacking + pallas_call.  No data transposes, only reshapes.
# ----------------------------------------------------------------------------
def temporal_block(x_nchw, w1, b1, w2, b2, wd=None, bd=None, *,
                   kernel_size, dilation, hw_tile=None, out_dtype=None):
    """x_nchw: (N, Cin, H, W).  Conv weights in PyTorch OIHW layout with kh=K, kw=1."""
    N, Cin, H, W = x_nchw.shape
    Cout, w1_cin, K, KW = w1.shape
    assert K == kernel_size and KW == 1 and w1_cin == Cin, \
        "only the causal kernel=(K,1) TCN instantiation is supported"
    assert K >= 2, "kernel_size >= 2 required (Chomp2d(0) is ill-defined in the module)"
    assert w2.shape == (Cout, Cout, K, 1)
    has_ds = wd is not None
    if not has_ds:
        assert Cin == Cout, "identity residual requires n_inputs == n_outputs"
    if out_dtype is None:
        out_dtype = x_nchw.dtype

    HW = H * W
    S = dilation * W                    # flattened lane shift of one dilated tap
    P = (K - 1) * S                     # per-stage causal history (lanes)
    PA = _round_up(P, 128)              # lane-aligned history prefix in scratch

    vmem_limit = _vmem_limit_bytes()
    if hw_tile is None:
        T = _pick_hw_tile(HW, Cin, Cout, K, S,
                          np.dtype(x_nchw.dtype).itemsize,
                          np.dtype(out_dtype).itemsize,
                          budget_bytes=vmem_limit // 2)
    else:
        assert hw_tile % 128 == 0, "hw_tile must be a multiple of 128 lanes"
        T = hw_tile
    HW_pad = _round_up(HW, T)
    n_tiles = HW_pad // T

    # --- weight repacking (done once; bf16 MXU operands) -----------------------
    def weight_cols(w):
        # OIHW (O, C, K, 1) -> (O, K*C); tap order reversed so that column block j
        # multiplies the input delayed by j dilated steps (causal form after chomp).
        wk = jnp.transpose(w[:, :, ::-1, 0], (0, 2, 1))      # (O, K, C)
        return wk.reshape(w.shape[0], K * w.shape[1])

    w1c = weight_cols(w1)                                     # (Cout, K*Cin)
    if has_ds:
        # Fuse the 1x1 downsample as extra output rows of the conv1 matmul:
        # the delay-0 column block of the im2col slab is exactly x.
        wd_rows = jnp.concatenate(
            [wd[:, :, 0, 0], jnp.zeros((Cout, (K - 1) * Cin), wd.dtype)], axis=1)
        w1c = jnp.concatenate([w1c, wd_rows], axis=0)         # (2*Cout, K*Cin)
        b1c = jnp.concatenate([b1, bd]).reshape(2 * Cout, 1)
    else:
        b1c = b1.reshape(Cout, 1)
    w1c = w1c.astype(jnp.bfloat16)
    w2c = weight_cols(w2).astype(jnp.bfloat16)                # (Cout, K*Cout)
    b1c = b1c.astype(jnp.float32)
    b2c = b2.reshape(Cout, 1).astype(jnp.float32)
    rows1 = w1c.shape[0]

    # --- lane-dense NCHW input, padded to a whole number of tiles ---------------
    x_flat = x_nchw.reshape(N, Cin, HW)                       # free reshape, stays NCHW
    if HW_pad != HW:
        x_flat = jnp.pad(x_flat, ((0, 0), (0, 0), (0, HW_pad - HW)))

    kernel = functools.partial(_temporal_block_kernel, kernel_size=K,
                               lane_step=S, has_downsample=has_ds)

    out_flat = pl.pallas_call(
        kernel,
        grid=(N, n_tiles),
        in_specs=[
            pl.BlockSpec((1, Cin, T), lambda n, t: (n, 0, t)),
            pl.BlockSpec((rows1, K * Cin), lambda n, t: (0, 0)),
            pl.BlockSpec((rows1, 1), lambda n, t: (0, 0)),
            pl.BlockSpec((Cout, K * Cout), lambda n, t: (0, 0)),
            pl.BlockSpec((Cout, 1), lambda n, t: (0, 0)),
        ],
        out_specs=pl.BlockSpec((1, Cout, T), lambda n, t: (n, 0, t)),
        out_shape=jax.ShapeDtypeStruct((N, Cout, HW_pad), out_dtype),
        scratch_shapes=[
            pltpu.VMEM((Cin, PA + T), jnp.bfloat16),    # carried x history + current tile
            pltpu.VMEM((Cout, PA + T), jnp.bfloat16),   # carried h1 history + current tile
        ],
        compiler_params=pltpu.CompilerParams(
            # Batch shards across cores; the HW axis carries history -> sequential.
            dimension_semantics=("parallel", "arbitrary"),
            vmem_limit_bytes=vmem_limit),
    )(x_flat, w1c, b1c, w2c, b2c)

    if HW_pad != HW:
        out_flat = out_flat[:, :, :HW]
    return out_flat.reshape(N, Cout, H, W)                    # free reshape back to NCHW


# ----------------------------------------------------------------------------
# Parameter setup / pure-JAX reference (correctness check only)
# ----------------------------------------------------------------------------
def apply_weight_norm(v):
    """PyTorch weight_norm(dim=0): w = g * v / ||v||_{dims!=0}, g initialised to ||v||."""
    norm = jnp.sqrt(jnp.sum(v * v, axis=(1, 2, 3), keepdims=True))
    g = norm
    return g * v / norm


def _reference(x, w1, b1, w2, b2, wd, bd, dilation, padding):
    def conv(inp, w, b):
        y = jax.lax.conv_general_dilated(
            inp, w, window_strides=(1, 1),
            padding=((padding, padding), (0, 0)),
            rhs_dilation=(dilation, 1),
            dimension_numbers=("NCHW", "OIHW", "NCHW"))
        y = y + b.reshape(1, -1, 1, 1)
        return y[:, :, : y.shape[2] - padding, :]             # Chomp2d (dim 2)

    h1 = jax.nn.relu(conv(x, w1, b1))
    h2 = jax.nn.relu(conv(h1, w2, b2))
    if wd is not None:
        res = jax.lax.conv_general_dilated(
            x, wd, (1, 1), "VALID",
            dimension_numbers=("NCHW", "OIHW", "NCHW")) + bd.reshape(1, -1, 1, 1)
    else:
        res = x
    return jax.nn.relu(h2 + res)


if __name__ == "__main__":
    key = jax.random.PRNGKey(0)
    ks = jax.random.split(key, 20)

    # bf16 MXU operands -> tolerances sized for bf16 matmuls with fp32 accumulate.
    RTOL, ATOL = 2e-2, 2e-3

    # --- Test 1: n_inputs != n_outputs (fused 1x1 downsample), single HW tile ----
    N, Cin, Cout = 2, 4, 8
    H, W = 16, 8                        # H = temporal (chomped) axis; H*W = 128 lanes
    K, dil = 3, 2
    x = jax.random.normal(ks[0], (N, Cin, H, W), jnp.float32)
    w1 = apply_weight_norm(0.01 * jax.random.normal(ks[1], (Cout, Cin, K, 1), jnp.float32))
    b1 = 0.01 * jax.random.normal(ks[2], (Cout,), jnp.float32)
    w2 = apply_weight_norm(0.01 * jax.random.normal(ks[3], (Cout, Cout, K, 1), jnp.float32))
    b2 = 0.01 * jax.random.normal(ks[4], (Cout,), jnp.float32)
    wd = 0.01 * jax.random.normal(ks[5], (Cout, Cin, 1, 1), jnp.float32)
    bd = 0.01 * jax.random.normal(ks[6], (Cout,), jnp.float32)

    out = jax.block_until_ready(
        temporal_block(x, w1, b1, w2, b2, wd, bd, kernel_size=K, dilation=dil))
    ref = _reference(x, w1, b1, w2, b2, wd, bd, dil, (K - 1) * dil)
    assert out.shape == (N, Cout, H, W)
    np.testing.assert_allclose(np.asarray(out), np.asarray(ref), rtol=RTOL, atol=ATOL)

    # --- Test 2: n_inputs == n_outputs (identity residual) -----------------------
    C = 8
    K2, dil2 = 2, 1
    x2 = jax.random.normal(ks[7], (N, C, H, W), jnp.float32)
    w1b = apply_weight_norm(0.01 * jax.random.normal(ks[8], (C, C, K2, 1), jnp.float32))
    b1b = 0.01 * jax.random.normal(ks[9], (C,), jnp.float32)
    w2b = apply_weight_norm(0.01 * jax.random.normal(ks[10], (C, C, K2, 1), jnp.float32))
    b2b = 0.01 * jax.random.normal(ks[11], (C,), jnp.float32)

    out2 = jax.block_until_ready(
        temporal_block(x2, w1b, b1b, w2b, b2b, kernel_size=K2, dilation=dil2))
    ref2 = _reference(x2, w1b, b1b, w2b, b2b, None, None, dil2, (K2 - 1) * dil2)
    assert out2.shape == (N, C, H, W)
    np.testing.assert_allclose(np.asarray(out2), np.asarray(ref2), rtol=RTOL, atol=ATOL)

    # --- Test 3: multi-tile HW grid with carried causal history + lane padding ---
    Cin3, Cout3, H3, W3 = 4, 16, 50, 8   # HW = 400 -> padded to 512, 4 tiles of 128 lanes
    K3, dil3 = 3, 4                      # history = (K-1)*dil*W = 64 lanes per conv stage
    x3 = jax.random.normal(ks[12], (N, Cin3, H3, W3), jnp.float32)
    w13 = apply_weight_norm(0.01 * jax.random.normal(ks[13], (Cout3, Cin3, K3, 1), jnp.float32))
    b13 = 0.01 * jax.random.normal(ks[14], (Cout3,), jnp.float32)
    w23 = apply_weight_norm(0.01 * jax.random.normal(ks[15], (Cout3, Cout3, K3, 1), jnp.float32))
    b23 = 0.01 * jax.random.normal(ks[16], (Cout3,), jnp.float32)
    wd3 = 0.01 * jax.random.normal(ks[17], (Cout3, Cin3, 1, 1), jnp.float32)
    bd3 = 0.01 * jax.random.normal(ks[18], (Cout3,), jnp.float32)

    out3 = jax.block_until_ready(
        temporal_block(x3, w13, b13, w23, b23, wd3, bd3,
                       kernel_size=K3, dilation=dil3, hw_tile=128))
    ref3 = _reference(x3, w13, b13, w23, b23, wd3, bd3, dil3, (K3 - 1) * dil3)
    assert out3.shape == (N, Cout3, H3, W3)
    np.testing.assert_allclose(np.asarray(out3), np.asarray(ref3), rtol=RTOL, atol=ATOL)

    print("KERNEL_OK")
</pallas_src>

<mosaic_0001>
module attributes {stable_mosaic.version = 11 : i64} {
  func.func @_temporal_block_kernel(%arg0: i32, %arg1: i32, %arg2: memref<1x4x128xf32, #tpu.memory_space<vmem>>, %arg3: memref<16x12xbf16, #tpu.memory_space<vmem>>, %arg4: memref<16x1xf32, #tpu.memory_space<vmem>>, %arg5: memref<8x24xbf16, #tpu.memory_space<vmem>>, %arg6: memref<8x1xf32, #tpu.memory_space<vmem>>, %arg7: memref<1x8x128xf32, #tpu.memory_space<vmem>>, %arg8: memref<4x256xbf16, #tpu.memory_space<vmem>>, %arg9: memref<8x256xbf16, #tpu.memory_space<vmem>>) attributes {dimension_semantics = [#tpu.dimension_semantics<parallel>, #tpu.dimension_semantics<arbitrary>], iteration_bounds = array<i64: 2, 1>, scalar_prefetch = 0 : i64, scratch_operands = 2 : i64, tpu.core_type = #tpu.core_type<tc>, window_params = [{transform_indices = @transform_0, window_bounds = array<i64: 1, 4, 128>}, {pipeline_mode = #tpu.pipeline_mode<synchronous>, transform_indices = @transform_1, window_bounds = array<i64: 16, 12>}, {pipeline_mode = #tpu.pipeline_mode<synchronous>, transform_indices = @transform_2, window_bounds = array<i64: 16, 1>}, {pipeline_mode = #tpu.pipeline_mode<synchronous>, transform_indices = @transform_3, window_bounds = array<i64: 8, 24>}, {pipeline_mode = #tpu.pipeline_mode<synchronous>, transform_indices = @transform_4, window_bounds = array<i64: 8, 1>}, {transform_indices = @transform_5, window_bounds = array<i64: 1, 8, 128>}]} {
    %c0_i32 = arith.constant 0 : i32
    %0 = arith.cmpi eq, %arg1, %c0_i32 : i32
    %1 = arith.extui %0 : i1 to i32
    %c0_i32_0 = arith.constant 0 : i32
    %2 = arith.cmpi ne, %1, %c0_i32_0 : i32
    scf.if %2 {
      %cst_31 = arith.constant 0.000000e+00 : bf16
      %41 = vector.broadcast %cst_31 : bf16 to vector<4x128xbf16>
      %c0_32 = arith.constant 0 : index
      %c0_33 = arith.constant 0 : index
      %42 = vector.load %arg8[%c0_32, %c0_33] : memref<4x256xbf16, #tpu.memory_space<vmem>>, vector<4x128xbf16>
      tpu.vector_store %arg8[%c0_32, %c0_33], %41 {strides = array<i32>} : memref<4x256xbf16, #tpu.memory_space<vmem>>, vector<4x128xbf16>,
      %cst_34 = arith.constant 0.000000e+00 : bf16
      %43 = vector.broadcast %cst_34 : bf16 to vector<8x128xbf16>
      %c0_35 = arith.constant 0 : index
      %c0_36 = arith.constant 0 : index
      %44 = vector.load %arg9[%c0_35, %c0_36] : memref<8x256xbf16, #tpu.memory_space<vmem>>, vector<8x128xbf16>
      tpu.vector_store %arg9[%c0_35, %c0_36], %43 {strides = array<i32>} : memref<8x256xbf16, #tpu.memory_space<vmem>>, vector<8x128xbf16>,
    } else {
    }
    %c0 = arith.constant 0 : index
    %c0_1 = arith.constant 0 : index
    %c0_2 = arith.constant 0 : index
    %3 = vector.load %arg2[%c0, %c0_1, %c0_2] : memref<1x4x128xf32, #tpu.memory_space<vmem>>, vector<1x4x128xf32>
    %4 = vector.shape_cast %3 : vector<1x4x128xf32> to vector<4x128xf32>
    %5 = arith.truncf %4 : vector<4x128xf32> to vector<4x128xbf16>
    %c0_3 = arith.constant 0 : index
    %c128 = arith.constant 128 : index
    %6 = vector.load %arg8[%c0_3, %c128] : memref<4x256xbf16, #tpu.memory_space<vmem>>, vector<4x128xbf16>
    tpu.vector_store %arg8[%c0_3, %c128], %5 {strides = array<i32>} : memref<4x256xbf16, #tpu.memory_space<vmem>>, vector<4x128xbf16>,
    %c0_4 = arith.constant 0 : index
    %c112 = arith.constant 112 : index
    %7 = vector.load %arg8[%c0_4, %c112] : memref<4x256xbf16, #tpu.memory_space<vmem>>, vector<4x128xbf16>
    %c0_5 = arith.constant 0 : index
    %c96 = arith.constant 96 : index
    %8 = vector.load %arg8[%c0_5, %c96] : memref<4x256xbf16, #tpu.memory_space<vmem>>, vector<4x128xbf16>
    %9 = vector.extract_strided_slice %5 {offsets = [0, 96], sizes = [4, 32], strides = [1, 1]} : vector<4x128xbf16> to vector<4x32xbf16>
    %c0_6 = arith.constant 0 : index
    %c96_7 = arith.constant 96 : index
    %10 = vector.load %arg8[%c0_6, %c96_7] : memref<4x256xbf16, #tpu.memory_space<vmem>>, vector<4x32xbf16>
    tpu.vector_store %arg8[%c0_6, %c96_7], %9 {strides = array<i32>} : memref<4x256xbf16, #tpu.memory_space<vmem>>, vector<4x32xbf16>,
    %11 = tpu.concatenate %5, %7, %8 in 0 : vector<4x128xbf16>, vector<4x128xbf16>, vector<4x128xbf16> -> vector<12x128xbf16>
    %c0_8 = arith.constant 0 : index
    %c0_9 = arith.constant 0 : index
    %12 = vector.load %arg3[%c0_8, %c0_9] : memref<16x12xbf16, #tpu.memory_space<vmem>>, vector<16x12xbf16>
    %cst = arith.constant dense<0.000000e+00> : vector<16x128xf32>
    %13 = tpu.matmul %12, %11, %cst {dimension_numbers = #tpu.dot_dimension_numbers<[1], [0], [0], [1], [0, 0, 1, 1], [], []>} : vector<16x12xbf16>, vector<12x128xbf16>, vector<16x128xf32> -> vector<16x128xf32>
    %c0_10 = arith.constant 0 : index
    %c0_11 = arith.constant 0 : index
    %14 = vector.load %arg4[%c0_10, %c0_11] : memref<16x1xf32, #tpu.memory_space<vmem>>, vector<16x1xf32>
    %15 = vector.broadcast %14 : vector<16x1xf32> to vector<16x128xf32>
    %16 = arith.addf %13, %15 : vector<16x128xf32>
    %17 = vector.extract_strided_slice %16 {offsets = [0, 0], sizes = [8, 128], strides = [1, 1]} : vector<16x128xf32> to vector<8x128xf32>
    %cst_12 = arith.constant 0.000000e+00 : f32
    %18 = vector.broadcast %cst_12 : f32 to vector<8x128xf32>
    %19 = arith.maximumf %17, %18 : vector<8x128xf32>
    %20 = vector.extract_strided_slice %16 {offsets = [8, 0], sizes = [8, 128], strides = [1, 1]} : vector<16x128xf32> to vector<8x128xf32>
    %21 = arith.truncf %19 : vector<8x128xf32> to vector<8x128xbf16>
    %c0_13 = arith.constant 0 : index
    %c128_14 = arith.constant 128 : index
    %22 = vector.load %arg9[%c0_13, %c128_14] : memref<8x256xbf16, #tpu.memory_space<vmem>>, vector<8x128xbf16>
    tpu.vector_store %arg9[%c0_13, %c128_14], %21 {strides = array<i32>} : memref<8x256xbf16, #tpu.memory_space<vmem>>, vector<8x128xbf16>,
    %c0_15 = arith.constant 0 : index
    %c112_16 = arith.constant 112 : index
    %23 = vector.load %arg9[%c0_15, %c112_16] : memref<8x256xbf16, #tpu.memory_space<vmem>>, vector<8x128xbf16>
    %c0_17 = arith.constant 0 : index
    %c96_18 = arith.constant 96 : index
    %24 = vector.load %arg9[%c0_17, %c96_18] : memref<8x256xbf16, #tpu.memory_space<vmem>>, vector<8x128xbf16>
    %25 = vector.extract_strided_slice %21 {offsets = [0, 96], sizes = [8, 32], strides = [1, 1]} : vector<8x128xbf16> to vector<8x32xbf16>
    %c0_19 = arith.constant 0 : index
    %c96_20 = arith.constant 96 : index
    %26 = vector.load %arg9[%c0_19, %c96_20] : memref<8x256xbf16, #tpu.memory_space<vmem>>, vector<8x32xbf16>
    tpu.vector_store %arg9[%c0_19, %c96_20], %25 {strides = array<i32>} : memref<8x256xbf16, #tpu.memory_space<vmem>>, vector<8x32xbf16>,
    %27 = tpu.concatenate %21, %23, %24 in 0 : vector<8x128xbf16>, vector<8x128xbf16>, vector<8x128xbf16> -> vector<24x128xbf16>
    %c0_21 = arith.constant 0 : index
    %c0_22 = arith.constant 0 : index
    %28 = vector.load %arg5[%c0_21, %c0_22] : memref<8x24xbf16, #tpu.memory_space<vmem>>, vector<8x24xbf16>
    %cst_23 = arith.constant dense<0.000000e+00> : vector<8x128xf32>
    %29 = tpu.matmul %28, %27, %cst_23 {dimension_numbers = #tpu.dot_dimension_numbers<[1], [0], [0], [1], [0, 0, 1, 1], [], []>} : vector<8x24xbf16>, vector<24x128xbf16>, vector<8x128xf32> -> vector<8x128xf32>
    %c0_24 = arith.constant 0 : index
    %c0_25 = arith.constant 0 : index
    %30 = vector.load %arg6[%c0_24, %c0_25] : memref<8x1xf32, #tpu.memory_space<vmem>>, vector<8x1xf32>
    %31 = vector.broadcast %30 : vector<8x1xf32> to vector<8x128xf32>
    %32 = arith.addf %29, %31 : vector<8x128xf32>
    %cst_26 = arith.constant 0.000000e+00 : f32
    %33 = vector.broadcast %cst_26 : f32 to vector<8x128xf32>
    %34 = arith.maximumf %32, %33 : vector<8x128xf32>
    %35 = arith.addf %34, %20 : vector<8x128xf32>
    %cst_27 = arith.constant 0.000000e+00 : f32
    %36 = vector.broadcast %cst_27 : f32 to vector<8x128xf32>
    %37 = arith.maximumf %35, %36 : vector<8x128xf32>
    %c0_28 = arith.constant 0 : index
    %c0_29 = arith.constant 0 : index
    %c0_30 = arith.constant 0 : index
    %38 = vector.load %arg7[%c0_28, %c0_29, %c0_30] : memref<1x8x128xf32, #tpu.memory_space<vmem>>, vector<1x8x128xf32>
    %39 = vector.shape_cast %38 : vector<1x8x128xf32> to vector<8x128xf32>
    %40 = vector.shape_cast %37 : vector<8x128xf32> to vector<1x8x128xf32>
    tpu.vector_store %arg7[%c0_28, %c0_29, %c0_30], %40 {strides = array<i32>} : memref<1x8x128xf32, #tpu.memory_space<vmem>>, vector<1x8x128xf32>,
    return
  }
  func.func @transform_0(%arg0: i32, %arg1: i32) -> (i32, i32, i32) {
    %c0_i32 = arith.constant 0 : i32
    %c0_i32_0 = arith.constant 0 : i32
    return %arg0, %c0_i32, %arg1 : i32, i32, i32
  }
  func.func @transform_1(%arg0: i32, %arg1: i32) -> (i32, i32) {
    %c0_i32 = arith.constant 0 : i32
    %c0_i32_0 = arith.constant 0 : i32
    %c0_i32_1 = arith.constant 0 : i32
    return %c0_i32, %c0_i32_0 : i32, i32
  }
  func.func @transform_2(%arg0: i32, %arg1: i32) -> (i32, i32) {
    %c0_i32 = arith.constant 0 : i32
    %c0_i32_0 = arith.constant 0 : i32
    %c0_i32_1 = arith.constant 0 : i32
    return %c0_i32, %c0_i32_0 : i32, i32
  }
  func.func @transform_3(%arg0: i32, %arg1: i32) -> (i32, i32) {
    %c0_i32 = arith.constant 0 : i32
    %c0_i32_0 = arith.constant 0 : i32
    %c0_i32_1 = arith.constant 0 : i32
    return %c0_i32, %c0_i32_0 : i32, i32
  }
  func.func @transform_4(%arg0: i32, %arg1: i32) -> (i32, i32) {
    %c0_i32 = arith.constant 0 : i32
    %c0_i32_0 = arith.constant 0 : i32
    %c0_i32_1 = arith.constant 0 : i32
    return %c0_i32, %c0_i32_0 : i32, i32
  }
  func.func @transform_5(%arg0: i32, %arg1: i32) -> (i32, i32, i32) {
    %c0_i32 = arith.constant 0 : i32
    %c0_i32_0 = arith.constant 0 : i32
    return %arg0, %c0_i32, %arg1 : i32, i32, i32
  }
}

</mosaic_0001>

<bundles_post_ra>
// kernel: tpu_custom_call.1
= control target key start
LH: loop header
LB: loop body
LE: loop exit
PB: predicated region body
PF: predicated region fallthrough
CT: control target
= control target key end

     0   :  { %10 = vsyncpa [#allocation5], 0  ;;  %s880_s0 = inlined_call_operand.vmem [shape: f32[2,4,128], index: 0, kind: input, shape index: {}]   ;;  %s881_s1 = inlined_call_operand.vmem [shape: bf16[16,12], index: 1, kind: input, shape index: {}]   ;;  %s882_s2 = inlined_call_operand.vmem [shape: f32[16,1], index: 2, kind: input, shape index: {}]   ;;  %s883_s3 = inlined_call_operand.vmem [shape: bf16[8,24], index: 3, kind: input, shape index: {}]   ;;  %s884_s4 = inlined_call_operand.vmem [shape: f32[8,1], index: 4, kind: input, shape index: {}]   ;;  %s885_s5 = inlined_call_operand.hbm [shape: f32[2,8,128], index: 5, kind: output, shape index: {}]  }
   0x1   :  { %12 = vsyncpa [#allocation5 + $0x1], 0  ;;  %s746_s18 = smov 0   ;;  %s748_s19 = smov 0  }
   0x2   :  { %s750_s20 = smov 0   ;;  %s752_s21 = smov 0  }
   0x3   :  { %s754_s22 = smov 0   ;;  %s756_s23 = smov 0  }
   0x4 LB: > { %s531_s24 = sadd.s32 4294967295, %s707_s23   ;;  %s532_s25 = sadd.s32 4294967294, %s707_s23   ;;  %s707_s23 = sphi %s756_s23, %s18_s23   ;;  %s703_s22 = sphi %s754_s22, %s892_s22   ;;  %s699_s21 = sphi %s752_s21, %s891_s21   ;;  %s695_s20 = sphi %s750_s20, %s890_s20   ;;  %s691_s19 = sphi %s748_s19, %s889_s19   ;;  %s687_s18 = sphi %s746_s18, %s888_s18  }
   0x5   : > { %s30_s26 = sadd.s32 1, %s703_s22  ;;  %s151_s27 = sadd.s32 1, %s695_s20 }
   0x6   : > { %p32_p0 = scmp.ge.s32.totalorder %s30_s26, 2  ;;  %p161_p1 = scmp.ne.s32.totalorder %s695_s20, %s691_s19 }
   0x7   : > { %p162_p2 = scmp.eq.s32.totalorder %s531_s24, 1  ;;  %p167_p3 = scmp.ne.s32.totalorder %s691_s19, %s687_s18 }
   0x8   : > { %s894_s26 = smov (%p32_p0, %s30_s26), 0  ;;  %p168_p5 = scmp.eq.s32.totalorder %s532_s25, 1 }
   0x9   : > { %p786_p4 = por %p162_p2, %p161_p1  ;;  %s146_s29 = ssub.s32 %s703_s22, %s894_s26 }
   0xa   : > { %p535_p6 = scmp.ge.s32.totalorder %s707_s23, 1  ;;  %p149_p7 = scmp.eq.s32.totalorder %s146_s29, 0 }
   0xb   : > { %p793_p8 = por %p168_p5, %p167_p3  ;;  %p208_p9 = scmp.lt.s32.totalorder %s707_s23, 3 }
   0xc   : > { %s799_s6 = scalar_select %p149_p7, %s695_s20, %s151_s27  }
   0xd   : > { %p209_p10 = pnand %p535_p6, %p208_p9 }
   0xe   : > { %p238_p11 = scmp.lt.s32.totalorder (!%p209_p10), %s699_s21, 1  ;;  %s713_s12 = smov (!%p209_p10), 32  }
   0xf   : > { %212 = sbr.rel (%p209_p10) target bundleno = 716 (0x2cc), region = 40  ;;  %s714_s13 = smov (!%p209_p10), 16  }
  0x10   : > { %s235_s9 = sand.u32 (!%p209_p10), 1, %s691_s19   ;;  %s715_s25 = smov (!%p209_p10), [#allocation4]  }
  0x11   : > { %s536_s10 = sshll.u32 (!%p209_p10), %s235_s9, 3  ;;  %s446_s17 = scalar_lea.sflag (!%p209_p10), [#allocation5], %s235_s9 }
  0x12   : > { %s635_s27 = sshll.u32 (!%p209_p10), %s715_s25, 4  ;;  %s636_s27 = int_to_ptr.vmem [resolvable:$false] %s635_s27 }
  0x14   : > { %v709_v0 = vmov 0   ;;  %s239_s7 = scalar_select %p238_p11, %s699_s21, 1  ;;  %v710_v1 = vmov 1983009808   ;;  %v263_v3 = vlaneseq  ;;  %v711_v9 = vmov 0.0   ;;  %v297_v16 = vld [vmem:[%s882_s2] sm:$0xff] }
  0x15   : > { %250 = vst [vmem:[#allocation2] sm:$0x3] %v709_v0  ;;  %251 = vst [vmem:[#allocation3] sm:$0xf] %v709_v0  ;;  %627 = vset.pattern.permute.xlu0 %v709_v0  ;;  %628 = vset.pattern.permute.xlu1 %v709_v0  ;;  %v261_v2 = vunpack.c.l.s4 %v710_v1  ;;  %vm256_vm0 = vcmask 1042176   ;;  %vm712_vm1 = vmmov 0  }
  0x16   : > { %s537_s8 = sshll.u32 %s239_s7, 2  ;;  %v264_v7 = vshrl.u32 %v263_v3, 7  ;;  %552 = vmatprep.subr.bf16.mxu0 %v711_v9  ;;  %558 = vmatprep.subr.bf16.mxu1 %v711_v9  ;;  %vm286_vm2 = vcmask 261120   ;;  %vm279_vm3 = vcmask 130048   ;;  %vm288_vm4 = vcmask 1041408   ;;  %v629_v26 = vld [vmem:[%s881_s1] sm:$0xff]  }
  0x17   : > { %s244_s11 = scalar_lea.vmem %s880_s0, %s537_s8  ;;  %v262_v6 = vunpack.c.0.s8 %v261_v2  ;;  %554 = vmatprep.mubr.msk.bf16.mxu0 %vm712_vm1, %v711_v9  ;;  %562 = vmatprep.mubr.msk.bf16.mxu1 %vm712_vm1, %v711_v9  ;;  %vm292_vm5 = vcmask 1043456   ;;  %vm318_vm6 = vcmask 1045504   ;;  %vm314_vm7 = vcmask 97280   ;;  %v388_v37 = vld [vmem:[%s884_s4] sm:$0xff]  ;;  %v298_v39 = vld [vmem:[%s882_s2 + $0x8] sm:$0xff] }
  0x18   : > { %v252_v4 = vld [vmem:[%s244_s11] sm:$0xf]  ;;  %vm366_vm8 = vcmask 1044224   ;;  %vm394_vm9 = vcmask 195584   ;;  %s544_s11 = sshll.u32 %s699_s21, 7  ;;  %s637_s21 = scalar_lea.vmem %s636_s27, 256 }
  0x19   : > { %v253_v5 = vpack.c.bf16 %v252_v4, %v252_v4  ;;  %v265_v8 = vsub.s32 %v262_v6, %v264_v7  ;;  %v387_v48 = vld [vmem:[%s883_s3] sm:$0xf]  ;;  %s458_s16 = scalar_lea.hbm %s885_s5, %s544_s11 }
  0x1b   : > { %254 = vst [vmem:[#allocation2 + $0x2] sm:$0x3] %v253_v5 }
  0x22   : > { %v255_v10 = vld [vmem:[#allocation2] sm:$0xf] }
  0x23   : > { %v273_v11 = vrot.slane %v255_v10, %v265_v8  ;;  %257 = vst.msk [vmem:[#allocation2] sm:$0x3] %vm256_vm0, %v253_v5  ;;  %v259_v12 = vcombine.low %v255_v10, %v255_v10 }
  0x25   : > { %v281_v13 = vcombine.low %v273_v11, %v273_v11  ;;  %v266_v14 = vrot.slane %v259_v12, %v265_v8 }
  0x27   : > { %282 = vrot.lane.b32.xlu1 %v281_v13, %s713_s12  ;;  %275 = vrot.lane.b32.xlu0 %v266_v14, %s714_s13  ;;  %v274_v15 = vcombine.high %v266_v14, %v266_v14 }
  0x2b   : > { %284 = vrot.lane.b32.xlu1 %v273_v11, %s713_s12  ;;  %277 = vrot.lane.b32.xlu0 %v274_v15, %s714_s13 }
  0x2f   : > { %301 = vperm.xlu0 %627, %v297_v16  }
  0x99   : > { %v283_v17 = vpop.permute.xlu1 %282  ;;  %v276_v18 = vpop.permute.xlu0 %275 }
  0x9d   : > { %v285_v19 = vpop.permute.xlu1 %284  ;;  %v278_v20 = vpop.permute.xlu0 %277 }
  0x9e   : > { %v287_v21 = vsel %vm286_vm2, %v283_v17, %v285_v19  ;;  %v280_v22 = vsel %vm279_vm3, %v276_v18, %v278_v20 }
  0x9f   : > { %v291_v23 = vsel %vm288_vm4, %v253_v5, %v280_v22 }
  0xa0   : > { %v294_v24 = vsel %vm292_vm5, %v291_v23, %v287_v21 }
  0xa1   : > { %v319_v25 = vsel %vm318_vm6, %v294_v24, 0 }
  0xa2   : > { %553 = vmatpush3.bf16.msra.mxu0 %v319_v25 }
  0xa5   : > { %555 = vmatmul.mubr.msk.bf16.vlgmr.msra.gmra.mxu0 %vm314_vm7, %v629_v26 }
  0xaa   : > { %v302_v27 = vpop.permute.xlu0 %301 }
 0x165   : > { %v355_v28 = vpop.f32.mrf.mxu0 }
 0x166   : > { %v356_v29 = vadd.f32 %v355_v28, %v302_v27 }
 0x167   : > { %v556_v30 = vpop.f32.mrf.mxu0 }
 0x168   : > { %v362_v31 = vmax.f32 %v356_v29, 0.0 }
 0x169   : > { %v358_v32 = vpop.f32.mrf.mxu0 }
 0x16a   : > { %v363_v33 = vpack.c.bf16 %v362_v31, %v362_v31 }
 0x16b   : > { %v557_v34 = vpop.f32.mrf.mxu0 }
 0x16c   : > { %364 = vst [vmem:[#allocation3 + $0x4] sm:$0xf] %v363_v33 }
 0x173   : > { %v365_v35 = vld [vmem:[#allocation3] sm:$0xff] }
 0x174   : > { %v540_v36 = vcombine.low %v365_v35, %v365_v35  ;;  %367 = vst.msk [vmem:[#allocation3] sm:$0xf] %vm366_vm8, %v363_v33  ;;  %v541_v38 = vcombine.high %v365_v35, %v365_v35 }
 0x176   : > { %373 = vrot.lane.b32.xlu0 %v540_v36, %s714_s13  ;;  %378 = vrot.lane.b32.xlu1 %v540_v36, %s713_s12 }
 0x17a   : > { %391 = vperm.xlu0 %627, %v388_v37   ;;  %380 = vrot.lane.b32.xlu1 %v541_v38, %s713_s12  ;;  %s237_s12 = scalar_lea.vmem [#allocation4], %s536_s10 }
 0x17e   : > { %375 = vrot.lane.b32.xlu1 %v541_v38, %s714_s13  ;;  %s460_s13 = sshll.u32 %s237_s12, 4  ;;  %s461_s13 = int_to_ptr.vmem [resolvable:$true] %s460_s13 }
 0x17f   : > { %s631_s24 = scalar_lea.vmem %s461_s13, 128  ;;  %p638_p1 = scmp.lt.s32.totalorder %s461_s13, %s636_s27 }
 0x180   : > { %p632_p12 = scmp.ne.s32.totalorder %s461_s13, %s631_s24  ;;  %p639_p2 = scmp.lt.s32.totalorder %s637_s21, %s631_s24 }
 0x182   : > { %306 = vperm.xlu1 %628, %v298_v39   ;;  %p633_p13 = pnand %p632_p12, %p786_p4  ;;  %p640_p3 = por %p639_p2, %p638_p1 }
 0x184   : > { %p634_p0 = pneg %p633_p13 }
 0x186   : > { %p641_p5 = pnand %p640_p3, %p634_p0 }
 0x1e8   : > { %v379_v40 = vpop.permute.xlu1 %378  ;;  %v374_v44 = vpop.permute.xlu0 %373 }
 0x1ec   : > { %v381_v41 = vpop.permute.xlu1 %380 }
 0x1ed   : > { %v382_v42 = vsel %vm286_vm2, %v379_v40, %v381_v41 }
 0x1ee   : > { %v399_v43 = vsel %vm292_vm5, %v382_v42, 0 }
 0x1ef   : > { %559 = vmatpush3.bf16.msra.mxu1 %v399_v43 }
 0x1f0   : > { %v376_v45 = vpop.permute.xlu1 %375  ;;  %560 = vmatprep.subr.bf16.mxu1 %v711_v9 }
 0x1f1   : > { %v377_v46 = vsel %vm279_vm3, %v374_v44, %v376_v45 }
 0x1f2   : > { %v385_v47 = vsel %vm292_vm5, %v363_v33, %v377_v46 }
 0x1f3   : > { %561 = vmatpush3.bf16.msra.mxu1 %v385_v47 }
 0x1f5   : > { %v392_v49 = vpop.permute.xlu0 %391 }
 0x1f6   : > { %563 = vmatmul.mubr.msk.bf16.vlgmr.msra.gmra.mxu1 %vm394_vm9, %v387_v48 }
 0x1fd   : > { %v307_v50 = vpop.permute.xlu1 %306 }
 0x1fe   : > { %v359_v54 = vadd.f32 %v358_v32, %v307_v50 }
 0x2b6   : > { %v435_v51 = vpop.f32.mrf.mxu1 }
 0x2b7   : > { %v436_v52 = vadd.f32 %v435_v51, %v392_v49 }
 0x2b8   : > { %v564_v53 = vpop.f32.mrf.mxu1 }
 0x2b9   : > { %v441_v55 = vmax.f32 %v436_v52, 0.0 }
 0x2ba   : > { %v438_v56 = vpop.f32.mrf.mxu1 }
 0x2bb   : > { %v442_v57 = vadd.f32 %v441_v55, %v359_v54 }
 0x2bc   : > { %v565_v58 = vpop.f32.mrf.mxu1 }
 0x2bd   : > { %v443_v59 = vmax.f32 %v442_v57, 0.0 }
 0x2bf   : > { %444 = vst [vmem:[%s237_s12] sm:$0xff] %v443_v59 }
 0x2c0   : > { %644 = shalt.err (!%p641_p5)
}
 0x2c1   : > { %s645_s29 = scalar_lea.hbm %s458_s16, 128  ;;  %s649_s9 = scalar_lea.hbm %s885_s5, 256 }
 0x2c2   : > { %p646_p6 = scmp.ne.s32.totalorder %s458_s16, %s645_s29  ;;  %p650_p10 = scmp.lt.s32.totalorder %s458_s16, %s885_s5 }
 0x2c3   : > { %p651_p11 = scmp.lt.s32.totalorder %s649_s9, %s645_s29 }
 0x2c4   : > { %p647_p7 = pnand %p646_p6, %p786_p4 }
 0x2c5   : > { %p652_p12 = por %p651_p11, %p650_p10 }
 0x2c6   : > { %p648_p9 = pneg %p647_p7 }
 0x2c8   : > { %p653_p13 = pnand %p652_p12, %p648_p9 }
 0x2ca   : > { %656 = shalt.err (!%p653_p13)
}
 0x2cb   : > { %566 = dma.vmem_to_hbm [thread:$0]  (%p786_p4), %s461_s13, 128, %s458_s16, %s446_s17  }
 0x2cc PF: > { %p572_p0 = scmp.ge.s32.totalorder %s707_s23, 2  ;;  %s472_s12 = sand.u32 1, %s687_s18  }
 0x2cd   : > { %s473_s14 = scalar_lea.sflag [#allocation5], %s472_s12 }
 0x2ce   : > { %p569_p1 = pnand %p572_p0, %p793_p8 }
 0x2d0   : > { %p570_p2 = pneg %p569_p1 }
 0x2d2   : > { %682 = dma.done.wait (%p570_p2), %s473_s14, 128  }
 0x2d3   : > { %684 = vsyncadd (%p570_p2), %s473_s14, 4294967168  ;;  %s18_s23 = sadd.s32 1, %s707_s23   ;;  %s888_s18 = smov %s691_s19 }
 0x2d4   : > { %p15_p3 = scmp.ge.s32.totalorder %s18_s23, 4   ;;  %s889_s19 = smov %s695_s20 }
 0x2d5   : > { %s890_s20 = smov %s799_s6  ;;  %s891_s21 = smov %s703_s22 }
 0x2d6   : > { %s892_s22 = smov %s894_s26  ;;  %17 = sbr.rel (!%p15_p3) target bundleno = 4 (0x4), region = 79 }
 0x2db   :  { %478 = vsyncpa [#allocation5], 1 }
 0x2dc   :  { %480 = vsyncpa [#allocation5 + $0x1], 1 }

</bundles_post_ra>
